<compile_context>
chip_gen: v5e
topology: v5e:2x2
jax: 0.10.0
libtpu: 0.0.40
codegen_flags: <defaults>
</compile_context>

<pallas_src>
import jax
import jax.numpy as jnp
from jax.experimental import pallas as pl
from jax.experimental.pallas import tpu as pltpu


# ---------------------------------------------------------------------------
# Kernel body: pure passthrough on one VMEM tile.
# ---------------------------------------------------------------------------
def _identity_kernel(x_ref, o_ref):
    o_ref[...] = x_ref[...]


# Below this total size a single full-extent block is used: there is nothing
# worth pipelining and the ~0.35 us per-grid-step overhead would dominate.
_SMALL_ARRAY_BYTES = 1 << 20


def _budgets():
    """(per-block byte budget, vmem_limit_bytes), chosen per TPU generation."""
    try:
        vmem_phys = int(pltpu.get_tpu_info().vmem_capacity_bytes)
    except Exception:
        vmem_phys = 64 << 20  # assume the tightest generation (v7x) when unknown
    if vmem_phys >= (96 << 20):      # v5e / v6e: 128 MiB physical VMEM
        return 8 << 20, 64 << 20
    return 4 << 20, 32 << 20         # v7x: 64 MiB physical / 32 MiB scoped


def _sublane_multiple(itemsize: int) -> int:
    """Dtype-native row multiple: 8 for f32, 16 for bf16/f16, 32 for int8/fp8."""
    return 8 * max(1, 4 // max(1, itemsize))


def _choose_lane_width(n_elems: int, itemsize: int) -> int:
    """Lane-dense slab width (multiple of 128); wider for larger arrays."""
    nbytes = n_elems * itemsize
    if nbytes >= 4 * _SMALL_ARRAY_BYTES:
        return 1024
    if nbytes >= (64 << 10):
        return 512
    return 128


def _choose_block_rows(rows: int, width: int, itemsize: int, block_budget: int) -> int:
    """Row tile: single block only for tiny arrays, else >=2 (even) grid steps."""
    mult = _sublane_multiple(itemsize)
    total_bytes = rows * width * itemsize
    if rows <= mult or total_bytes <= _SMALL_ARRAY_BYTES:
        # Full-extent block (always a legal block shape); nothing to pipeline.
        return rows
    row_bytes = width * itemsize
    tb_budget = max(mult, (block_budget // row_bytes) // mult * mult)
    # >=2 steps so BlockSpec double-buffering overlaps input/output DMAs; even
    # count so v7x's two TensorCores both get work on the "parallel" axis.
    n_blocks = max(2, pl.cdiv(rows, tb_budget))
    if n_blocks % 2:
        n_blocks += 1
    tb = pl.cdiv(rows, n_blocks)
    tb = pl.cdiv(tb, mult) * mult          # round up to the sublane multiple
    return max(mult, min(tb, rows))


def _pallas_copy_2d(x2d: jax.Array, block_budget: int, vmem_limit: int) -> jax.Array:
    """Tiled, lane-dense identity copy of a 2-D slab through Pallas."""
    rows, width = x2d.shape
    tb = _choose_block_rows(rows, width, x2d.dtype.itemsize, block_budget)
    grid = (pl.cdiv(rows, tb),)

    return pl.pallas_call(
        _identity_kernel,
        out_shape=jax.ShapeDtypeStruct((rows, width), x2d.dtype),
        grid_spec=pl.GridSpec(
            grid=grid,
            in_specs=[pl.BlockSpec((tb, width), lambda i: (i, 0))],
            out_specs=pl.BlockSpec((tb, width), lambda i: (i, 0)),
        ),
        compiler_params=pltpu.CompilerParams(
            dimension_semantics=("parallel",),
            vmem_limit_bytes=vmem_limit,
        ),
    )(x2d)


def identity_feature_map(logits: jax.Array, *, materialize: bool = False) -> jax.Array:
    """Pallas implementation of IdentityFeatureMap.forward(logits).

    Default (materialize=False): true identity — returns the input unchanged
    with zero HBM traffic, matching the PyTorch module exactly.

    materialize=True: produces a fresh buffer via a lane-dense tiled Pallas copy.
    """
    if not materialize:
        return logits

    orig_shape = logits.shape
    n = int(logits.size)
    if n == 0:
        return logits

    itemsize = logits.dtype.itemsize
    block_budget, vmem_limit = _budgets()

    width = _choose_lane_width(n, itemsize)
    n_pad = pl.cdiv(n, width) * width

    flat = logits.reshape(n)
    if n_pad != n:
        # Pad the flattened slab up to the lane width: <= width-1 extra elements
        # of HBM traffic buys unmasked stores and wide DMAs for ragged shapes.
        flat = jnp.pad(flat, (0, n_pad - n))

    out = _pallas_copy_2d(flat.reshape(n_pad // width, width), block_budget, vmem_limit)

    out = out.reshape(n_pad)
    if n_pad != n:
        out = out[:n]
    return out.reshape(orig_shape)


class IdentityFeatureMapPallas:
    """Mirror of the PyTorch IdentityFeatureMap module (no parameters)."""

    def __init__(self, num_features: int):
        self.num_features = num_features

    def __call__(self, logits: jax.Array, *, materialize: bool = False) -> jax.Array:
        assert logits.shape[-1] == self.num_features
        return identity_feature_map(logits, materialize=materialize)


if __name__ == "__main__":
    key = jax.random.PRNGKey(0)
    batch, num_features = 8, 32
    logits = jax.random.normal(key, (batch, num_features), dtype=jnp.float32)

    fmap = IdentityFeatureMapPallas(num_features)

    # 1) True identity path (zero-copy), exactly matching the PyTorch forward.
    out_fast = fmap(logits)
    assert out_fast.shape == logits.shape and out_fast.dtype == logits.dtype

    # 2) Pallas materialized-copy path (lane-dense tiled kernel, single block).
    out_copy = jax.block_until_ready(fmap(logits, materialize=True))
    assert out_copy.shape == logits.shape and out_copy.dtype == logits.dtype
    assert jnp.array_equal(out_copy, logits)

    # 3) Ragged path: element count not divisible by 128 (pad -> copy -> slice).
    logits_ragged = jax.random.normal(jax.random.PRNGKey(1), (10, 48), dtype=jnp.float32)
    out_ragged = jax.block_until_ready(
        identity_feature_map(logits_ragged, materialize=True))
    assert jnp.array_equal(out_ragged, logits_ragged)

    # 4) bf16 path: exercises the 16-row sublane-multiple rounding.
    logits_bf16 = jax.random.normal(jax.random.PRNGKey(2), (8, 32)).astype(jnp.bfloat16)
    out_bf16 = jax.block_until_ready(
        identity_feature_map(logits_bf16, materialize=True))
    assert out_bf16.dtype == jnp.bfloat16
    assert jnp.array_equal(out_bf16, logits_bf16)

    # 5) Medium (2 MiB) input: exercises the >=2-step, even-count pipelined grid.
    logits_med = jax.random.normal(jax.random.PRNGKey(3), (1024, 512), dtype=jnp.float32)
    out_med = jax.block_until_ready(identity_feature_map(logits_med, materialize=True))
    assert jnp.array_equal(out_med, logits_med)

    print("KERNEL_OK")
</pallas_src>

<mosaic_0001>
module attributes {stable_mosaic.version = 11 : i64} {
  func.func @_identity_kernel(%arg0: i32, %arg1: memref<2x128xf32, #tpu.memory_space<vmem>>, %arg2: memref<2x128xf32, #tpu.memory_space<vmem>>) attributes {dimension_semantics = [#tpu.dimension_semantics<parallel>], iteration_bounds = array<i64: 1>, scalar_prefetch = 0 : i64, scratch_operands = 0 : i64, tpu.core_type = #tpu.core_type<tc>, window_params = [{transform_indices = @transform_0, window_bounds = array<i64: 2, 128>}, {transform_indices = @transform_1, window_bounds = array<i64: 2, 128>}]} {
    %c0 = arith.constant 0 : index
    %c0_0 = arith.constant 0 : index
    %0 = vector.load %arg1[%c0, %c0_0] : memref<2x128xf32, #tpu.memory_space<vmem>>, vector<2x128xf32>
    %c0_1 = arith.constant 0 : index
    %c0_2 = arith.constant 0 : index
    %1 = vector.load %arg2[%c0_1, %c0_2] : memref<2x128xf32, #tpu.memory_space<vmem>>, vector<2x128xf32>
    tpu.vector_store %arg2[%c0_1, %c0_2], %0 {strides = array<i32>} : memref<2x128xf32, #tpu.memory_space<vmem>>, vector<2x128xf32>,
    return
  }
  func.func @transform_0(%arg0: i32) -> (i32, i32) {
    %c0_i32 = arith.constant 0 : i32
    %c0_i32_0 = arith.constant 0 : i32
    return %arg0, %c0_i32 : i32, i32
  }
  func.func @transform_1(%arg0: i32) -> (i32, i32) {
    %c0_i32 = arith.constant 0 : i32
    %c0_i32_0 = arith.constant 0 : i32
    return %arg0, %c0_i32 : i32, i32
  }
}

</mosaic_0001>

<bundles_post_ra>
// kernel: tpu_custom_call.1
= control target key start
LH: loop header
LB: loop body
LE: loop exit
PB: predicated region body
PF: predicated region fallthrough
CT: control target
= control target key end

     0   :  { %6 = vsyncpa [#allocation3], 0  ;;  %s114_s0 = inlined_call_operand.hbm [shape: f32[2,128], index: 0, kind: input, shape index: {}]   ;;  %s115_s1 = inlined_call_operand.hbm [shape: f32[2,128], index: 1, kind: output, shape index: {}]  }
   0x1   :  { %7 = vsyncpa [#allocation4], 0  ;;  %s13_s8 = sshll.u32 %s114_s0, 4  ;;  %s96_s9 = smov [#allocation2]   ;;  %s14_s8 = int_to_ptr.hbm [resolvable:$true] %s13_s8 }
   0x2   :  { %s15_s10 = sshll.u32 %s96_s9, 4  ;;  %s16_s10 = int_to_ptr.vmem [resolvable:$true] %s15_s10 }
   0x3   :  { %18 = dma.hbm_to_vmem [thread:$0]  %s14_s8, 32, %s16_s10, [#allocation3]  }
   0x4   :  { %92 = dma.done.wait [#allocation3], 32  }
   0x5   :  { %93 = vsyncadd [#allocation3], 4294967264  ;;  %s97_s11 = smov [#allocation5]   ;;  %s32_s15 = sshll.u32 %s115_s1, 4  ;;  %v23_v0 = vld [vmem:[#allocation2] sm:$0x3]  ;;  %s33_s15 = int_to_ptr.hbm [resolvable:$true] %s32_s15 }
   0x6   :  { %s30_s12 = sshll.u32 %s97_s11, 4  ;;  %24 = vst [vmem:[#allocation5] sm:$0x3] %v23_v0  ;;  %s31_s12 = int_to_ptr.vmem [resolvable:$true] %s30_s12 }
   0x7   :  { %35 = dma.vmem_to_hbm [thread:$0]  %s31_s12, 32, %s33_s15, [#allocation4]  }
   0x8   :  { %94 = dma.done.wait [#allocation4], 32  }
   0x9   :  { %95 = vsyncadd [#allocation4], 4294967264 }
   0xa   :  { %40 = vsyncpa [#allocation3], 1 }
   0xb   :  { %41 = vsyncpa [#allocation4], 1 }

</bundles_post_ra>
